<compile_context>
chip_gen: v7x
topology: tpu7x:2x2x1
jax: 0.10.0
libtpu: 0.0.40
codegen_flags: <defaults>
</compile_context>

<pallas_src>
import jax
import jax.numpy as jnp
from jax import lax
from jax.experimental import pallas as pl
from jax.experimental.pallas import tpu as pltpu


_MAX_TILE_B = 512  # rows per grid step; 3*512*16*4B ≈ 96 KiB double-buffered,
                   # far under the 32 MiB default scoped VMEM on any gen.


def _round_up(x, m):
    return (x + m - 1) // m * m


def net1_kernel(xs_ref, w_ref, b_ref, out_ref):
    w = w_ref[...]        # (input_dim, 2)  fused weight  w1 @ w2
    bias = b_ref[...]     # (1, 2)          fused bias    b1 @ w2 + b2

    # Fused single-layer embed, one stream per group (a = dummy reference,
    # b = latest value, c = non-latest value).  Rank-2 MXU dots; the fused
    # weight stays resident across all three.
    a = jnp.dot(xs_ref[0], w, preferred_element_type=jnp.float32) + bias
    b = jnp.dot(xs_ref[1], w, preferred_element_type=jnp.float32) + bias
    c = jnp.dot(xs_ref[2], w, preferred_element_type=jnp.float32) + bias

    # Embeddings are exactly 2-wide -> explicit 2-lane dot products on the
    # VPU (no XLU cross-lane reductions).
    a0, a1 = a[:, 0:1], a[:, 1:2]
    b0, b1 = b[:, 0:1], b[:, 1:2]
    c0, c1 = c[:, 0:1], c[:, 1:2]

    na2 = a0 * a0 + a1 * a1
    nb2 = b0 * b0 + b1 * b1
    nc2 = c0 * c0 + c1 * c1
    dab = a0 * b0 + a1 * b1
    dac = a0 * c0 + a1 * c1
    dbc = b0 * c0 + b1 * c1

    # torch: cos = dot / max(||u||*||v||, eps), eps = 1e-8
    #      = dot * rsqrt(max(||u||^2 * ||v||^2, eps^2))
    eps2 = jnp.float32(1e-16)
    pos = dab * lax.rsqrt(jnp.maximum(na2 * nb2, eps2))            # (T, 1)
    neg = dac * lax.rsqrt(jnp.maximum(na2 * nc2, eps2))            # (T, 1)
    margin = 1.0 - dbc * lax.rsqrt(jnp.maximum(nb2 * nc2, eps2))   # (T, 1)

    # Packed output [adaptive_margin, pos, neg]; static column stores, no
    # lane-axis concatenate.
    out_ref[:, 0:1] = margin
    out_ref[:, 1:2] = pos
    out_ref[:, 2:3] = neg


@jax.jit
def net1_forward(x0, x1, x2, w1, b1, w2, b2):
    B, D = x0.shape

    # Exact algebraic fusion of the two Linear layers (eval-mode Dropout is
    # identity, no nonlinearity in between):
    #   z = (x @ w1 + b1) @ w2 + b2 = x @ (w1 @ w2) + (b1 @ w2 + b2)
    w_fused = (w1 @ w2).astype(jnp.float32)            # (D, 2)
    b_fused = (b1 @ w2 + b2).astype(jnp.float32)       # (1, 2)

    # One stacked operand so matching a/b/c rows live in the same batch tile.
    # (Callers that already hold a stacked (3, B, D) array can pass it
    # directly and skip this dispatch.)
    xs = jnp.stack([x0, x1, x2]).astype(jnp.float32)   # (3, B, D)

    # Keep the batch tile a multiple of 8 so all row slices are sublane
    # aligned; pad the tail if the caller's B is not.
    tile = min(_round_up(B, 8), _MAX_TILE_B)
    b_pad = _round_up(B, tile)
    if b_pad != B:
        xs = jnp.pad(xs, ((0, 0), (0, b_pad - B), (0, 0)))

    out = pl.pallas_call(
        net1_kernel,
        out_shape=jax.ShapeDtypeStruct((b_pad, 3), jnp.float32),
        grid=(b_pad // tile,),
        in_specs=[
            pl.BlockSpec((3, tile, D), lambda i: (0, i, 0)),
            pl.BlockSpec((D, 2), lambda i: (0, 0)),
            pl.BlockSpec((1, 2), lambda i: (0, 0)),
        ],
        out_specs=pl.BlockSpec((tile, 3), lambda i: (i, 0)),
        compiler_params=pltpu.CompilerParams(
            dimension_semantics=("parallel",)),
    )(xs, w_fused, b_fused)

    # match torch shapes: CosineSimilarity(dim=1) over (B, 2) -> (B,)
    adaptive_margin = out[:B, 0]
    pos = out[:B, 1]
    neg = out[:B, 2]
    return adaptive_margin, pos, neg


def init_params(key, input_dim, embed_dim):
    k1, k2, k3, k4 = jax.random.split(key, 4)
    # deterministic "uniform(-1/sqrt(fan_in), 1/sqrt(fan_in))" style init
    lim1 = 1.0 / jnp.sqrt(jnp.float32(input_dim))
    lim2 = 1.0 / jnp.sqrt(jnp.float32(embed_dim))
    w1 = jax.random.uniform(k1, (input_dim, embed_dim), jnp.float32, -lim1, lim1)
    b1 = jax.random.uniform(k2, (1, embed_dim), jnp.float32, -lim1, lim1)
    w2 = jax.random.uniform(k3, (embed_dim, 2), jnp.float32, -lim2, lim2)
    b2 = jax.random.uniform(k4, (1, 2), jnp.float32, -lim2, lim2)
    return w1, b1, w2, b2


def _reference(x0, x1, x2, w1, b1, w2, b2):
    """Pure-JAX reference matching Net1.forward (eval mode, f32 cosine)."""
    def embed(x):
        return (x @ w1 + b1) @ w2 + b2

    a, b, c = embed(x0), embed(x1), embed(x2)
    eps = 1e-8

    def cos(u, v):
        num = jnp.sum(u * v, axis=1)
        den = jnp.maximum(
            jnp.linalg.norm(u, axis=1) * jnp.linalg.norm(v, axis=1), eps)
        return num / den

    return 1.0 - cos(b, c), cos(a, b), cos(a, c)


if __name__ == "__main__":
    B, input_dim, embed_dim = 8, 16, 32

    key = jax.random.PRNGKey(0)
    kx0, kx1, kx2, kp = jax.random.split(key, 4)
    x0 = jax.random.normal(kx0, (B, input_dim), jnp.float32)
    x1 = jax.random.normal(kx1, (B, input_dim), jnp.float32)
    x2 = jax.random.normal(kx2, (B, input_dim), jnp.float32)
    w1, b1, w2, b2 = init_params(kp, input_dim, embed_dim)

    adaptive_margin, pos, neg = net1_forward(x0, x1, x2, w1, b1, w2, b2)
    jax.block_until_ready((adaptive_margin, pos, neg))

    assert adaptive_margin.shape == (B,)
    assert pos.shape == (B,)
    assert neg.shape == (B,)

    m_ref, p_ref, n_ref = _reference(x0, x1, x2, w1, b1, w2, b2)
    assert jnp.allclose(adaptive_margin, m_ref, rtol=1e-4, atol=1e-5)
    assert jnp.allclose(pos, p_ref, rtol=1e-4, atol=1e-5)
    assert jnp.allclose(neg, n_ref, rtol=1e-4, atol=1e-5)

    print("KERNEL_OK")
</pallas_src>

<mosaic_0001>
module attributes {stable_mosaic.version = 11 : i64} {
  func.func @net1_kernel(%arg0: i32, %arg1: memref<3x8x16xf32, #tpu.memory_space<vmem>>, %arg2: memref<16x2xf32, #tpu.memory_space<vmem>>, %arg3: memref<1x2xf32, #tpu.memory_space<vmem>>, %arg4: memref<8x3xf32, #tpu.memory_space<vmem>>) attributes {dimension_semantics = [#tpu.dimension_semantics<parallel>], iteration_bounds = array<i64: 1>, scalar_prefetch = 0 : i64, scratch_operands = 0 : i64, tpu.core_type = #tpu.core_type<tc>, window_params = [{transform_indices = @transform_0, window_bounds = array<i64: 3, 8, 16>}, {pipeline_mode = #tpu.pipeline_mode<synchronous>, transform_indices = @transform_1, window_bounds = array<i64: 16, 2>}, {pipeline_mode = #tpu.pipeline_mode<synchronous>, transform_indices = @transform_2, window_bounds = array<i64: 1, 2>}, {transform_indices = @transform_3, window_bounds = array<i64: 8, 3>}]} {
    %c0 = arith.constant 0 : index
    %c0_0 = arith.constant 0 : index
    %0 = vector.load %arg2[%c0, %c0_0] : memref<16x2xf32, #tpu.memory_space<vmem>>, vector<16x2xf32>
    %c0_1 = arith.constant 0 : index
    %c0_2 = arith.constant 0 : index
    %1 = vector.load %arg3[%c0_1, %c0_2] : memref<1x2xf32, #tpu.memory_space<vmem>>, vector<1x2xf32>
    %c0_3 = arith.constant 0 : index
    %c0_4 = arith.constant 0 : index
    %c0_5 = arith.constant 0 : index
    %2 = vector.load %arg1[%c0_3, %c0_4, %c0_5] : memref<3x8x16xf32, #tpu.memory_space<vmem>>, vector<1x8x16xf32>
    %3 = vector.shape_cast %2 : vector<1x8x16xf32> to vector<8x16xf32>
    %cst = arith.constant dense<0.000000e+00> : vector<8x2xf32>
    %4 = tpu.matmul %3, %0, %cst {dimension_numbers = #tpu.dot_dimension_numbers<[1], [0], [0], [1], [0, 0, 1, 1], [], []>} : vector<8x16xf32>, vector<16x2xf32>, vector<8x2xf32> -> vector<8x2xf32>
    %5 = vector.broadcast %1 : vector<1x2xf32> to vector<8x2xf32>
    %6 = arith.addf %4, %5 : vector<8x2xf32>
    %c1 = arith.constant 1 : index
    %c0_6 = arith.constant 0 : index
    %c0_7 = arith.constant 0 : index
    %7 = vector.load %arg1[%c1, %c0_6, %c0_7] : memref<3x8x16xf32, #tpu.memory_space<vmem>>, vector<1x8x16xf32>
    %8 = vector.shape_cast %7 : vector<1x8x16xf32> to vector<8x16xf32>
    %cst_8 = arith.constant dense<0.000000e+00> : vector<8x2xf32>
    %9 = tpu.matmul %8, %0, %cst_8 {dimension_numbers = #tpu.dot_dimension_numbers<[1], [0], [0], [1], [0, 0, 1, 1], [], []>} : vector<8x16xf32>, vector<16x2xf32>, vector<8x2xf32> -> vector<8x2xf32>
    %10 = vector.broadcast %1 : vector<1x2xf32> to vector<8x2xf32>
    %11 = arith.addf %9, %10 : vector<8x2xf32>
    %c2 = arith.constant 2 : index
    %c0_9 = arith.constant 0 : index
    %c0_10 = arith.constant 0 : index
    %12 = vector.load %arg1[%c2, %c0_9, %c0_10] : memref<3x8x16xf32, #tpu.memory_space<vmem>>, vector<1x8x16xf32>
    %13 = vector.shape_cast %12 : vector<1x8x16xf32> to vector<8x16xf32>
    %cst_11 = arith.constant dense<0.000000e+00> : vector<8x2xf32>
    %14 = tpu.matmul %13, %0, %cst_11 {dimension_numbers = #tpu.dot_dimension_numbers<[1], [0], [0], [1], [0, 0, 1, 1], [], []>} : vector<8x16xf32>, vector<16x2xf32>, vector<8x2xf32> -> vector<8x2xf32>
    %15 = vector.broadcast %1 : vector<1x2xf32> to vector<8x2xf32>
    %16 = arith.addf %14, %15 : vector<8x2xf32>
    %17 = vector.extract_strided_slice %6 {offsets = [0, 0], sizes = [8, 1], strides = [1, 1]} : vector<8x2xf32> to vector<8x1xf32>
    %18 = vector.extract_strided_slice %6 {offsets = [0, 1], sizes = [8, 1], strides = [1, 1]} : vector<8x2xf32> to vector<8x1xf32>
    %19 = vector.extract_strided_slice %11 {offsets = [0, 0], sizes = [8, 1], strides = [1, 1]} : vector<8x2xf32> to vector<8x1xf32>
    %20 = vector.extract_strided_slice %11 {offsets = [0, 1], sizes = [8, 1], strides = [1, 1]} : vector<8x2xf32> to vector<8x1xf32>
    %21 = vector.extract_strided_slice %16 {offsets = [0, 0], sizes = [8, 1], strides = [1, 1]} : vector<8x2xf32> to vector<8x1xf32>
    %22 = vector.extract_strided_slice %16 {offsets = [0, 1], sizes = [8, 1], strides = [1, 1]} : vector<8x2xf32> to vector<8x1xf32>
    %23 = arith.mulf %17, %17 : vector<8x1xf32>
    %24 = arith.mulf %18, %18 : vector<8x1xf32>
    %25 = arith.addf %23, %24 : vector<8x1xf32>
    %26 = arith.mulf %19, %19 : vector<8x1xf32>
    %27 = arith.mulf %20, %20 : vector<8x1xf32>
    %28 = arith.addf %26, %27 : vector<8x1xf32>
    %29 = arith.mulf %21, %21 : vector<8x1xf32>
    %30 = arith.mulf %22, %22 : vector<8x1xf32>
    %31 = arith.addf %29, %30 : vector<8x1xf32>
    %32 = arith.mulf %17, %19 : vector<8x1xf32>
    %33 = arith.mulf %18, %20 : vector<8x1xf32>
    %34 = arith.addf %32, %33 : vector<8x1xf32>
    %35 = arith.mulf %17, %21 : vector<8x1xf32>
    %36 = arith.mulf %18, %22 : vector<8x1xf32>
    %37 = arith.addf %35, %36 : vector<8x1xf32>
    %38 = arith.mulf %19, %21 : vector<8x1xf32>
    %39 = arith.mulf %20, %22 : vector<8x1xf32>
    %40 = arith.addf %38, %39 : vector<8x1xf32>
    %41 = arith.mulf %25, %28 : vector<8x1xf32>
    %cst_12 = arith.constant 1.000000e-16 : f32
    %42 = vector.broadcast %cst_12 : f32 to vector<8x1xf32>
    %43 = arith.maximumf %41, %42 : vector<8x1xf32>
    %44 = math.rsqrt %43 : vector<8x1xf32>
    %45 = arith.mulf %34, %44 : vector<8x1xf32>
    %46 = arith.mulf %25, %31 : vector<8x1xf32>
    %cst_13 = arith.constant 1.000000e-16 : f32
    %47 = vector.broadcast %cst_13 : f32 to vector<8x1xf32>
    %48 = arith.maximumf %46, %47 : vector<8x1xf32>
    %49 = math.rsqrt %48 : vector<8x1xf32>
    %50 = arith.mulf %37, %49 : vector<8x1xf32>
    %51 = arith.mulf %28, %31 : vector<8x1xf32>
    %cst_14 = arith.constant 1.000000e-16 : f32
    %52 = vector.broadcast %cst_14 : f32 to vector<8x1xf32>
    %53 = arith.maximumf %51, %52 : vector<8x1xf32>
    %54 = math.rsqrt %53 : vector<8x1xf32>
    %55 = arith.mulf %40, %54 : vector<8x1xf32>
    %cst_15 = arith.constant 1.000000e+00 : f32
    %56 = vector.broadcast %cst_15 : f32 to vector<8x1xf32>
    %57 = arith.subf %56, %55 : vector<8x1xf32>
    %c0_16 = arith.constant 0 : index
    %c0_17 = arith.constant 0 : index
    %58 = vector.load %arg4[%c0_16, %c0_17] : memref<8x3xf32, #tpu.memory_space<vmem>>, vector<8x1xf32>
    tpu.vector_store %arg4[%c0_16, %c0_17], %57 {strides = array<i32>} : memref<8x3xf32, #tpu.memory_space<vmem>>, vector<8x1xf32>,
    %c0_18 = arith.constant 0 : index
    %c1_19 = arith.constant 1 : index
    %59 = vector.load %arg4[%c0_18, %c1_19] : memref<8x3xf32, #tpu.memory_space<vmem>>, vector<8x1xf32>
    tpu.vector_store %arg4[%c0_18, %c1_19], %45 {strides = array<i32>} : memref<8x3xf32, #tpu.memory_space<vmem>>, vector<8x1xf32>,
    %c0_20 = arith.constant 0 : index
    %c2_21 = arith.constant 2 : index
    %60 = vector.load %arg4[%c0_20, %c2_21] : memref<8x3xf32, #tpu.memory_space<vmem>>, vector<8x1xf32>
    tpu.vector_store %arg4[%c0_20, %c2_21], %50 {strides = array<i32>} : memref<8x3xf32, #tpu.memory_space<vmem>>, vector<8x1xf32>,
    return
  }
  func.func @transform_0(%arg0: i32) -> (i32, i32, i32) {
    %c0_i32 = arith.constant 0 : i32
    %c0_i32_0 = arith.constant 0 : i32
    %c0_i32_1 = arith.constant 0 : i32
    return %c0_i32, %arg0, %c0_i32_0 : i32, i32, i32
  }
  func.func @transform_1(%arg0: i32) -> (i32, i32) {
    %c0_i32 = arith.constant 0 : i32
    %c0_i32_0 = arith.constant 0 : i32
    %c0_i32_1 = arith.constant 0 : i32
    return %c0_i32, %c0_i32_0 : i32, i32
  }
  func.func @transform_2(%arg0: i32) -> (i32, i32) {
    %c0_i32 = arith.constant 0 : i32
    %c0_i32_0 = arith.constant 0 : i32
    %c0_i32_1 = arith.constant 0 : i32
    return %c0_i32, %c0_i32_0 : i32, i32
  }
  func.func @transform_3(%arg0: i32) -> (i32, i32) {
    %c0_i32 = arith.constant 0 : i32
    %c0_i32_0 = arith.constant 0 : i32
    return %arg0, %c0_i32 : i32, i32
  }
}

</mosaic_0001>

<bundles_post_ra>
// kernel: net1_forward.1
= control target key start
LH: loop header
LB: loop body
LE: loop exit
PB: predicated region body
PF: predicated region fallthrough
CT: control target
= control target key end

     0   :  { %v372_v0 = vmov 0.0|0.0   ;;  %vm373_vm0 = vmmov 0   ;;  %v374_v4 = vmov 0.0   ;;  %vm24_vm1 = vcmask 130048   ;;  %s375_s23 = smov 127   ;;  %s425_s1 = inlined_call_operand.vmem [shape: f32[16,2], index: 1, kind: input, shape index: {}]   ;;  %s426_s0 = inlined_call_operand.vmem [shape: f32[3,8,16], index: 0, kind: input, shape index: {}]   ;;  %s427_s2 = inlined_call_operand.vmem [shape: f32[1,2], index: 2, kind: input, shape index: {}]   ;;  %s428_s3 = inlined_call_operand.vmem [shape: f32[8,3], index: 3, kind: output, shape index: {}]  }
   0x1   :  { %351 = vmatprep.subr.bf16.mxu0 %v372_v0  ;;  %354 = vmatprep.subr.bf16.mxu1 %v372_v0  ;;  %v14_v1 = vld [vmem:[%s425_s1] sm:$0xff]  ;;  %v15_v2 = vld [vmem:[%s425_s1 + $0x8] sm:$0xff]  ;;  %v319_v7 = vld [vmem:[%s426_s0 + $0x10] sm:$0xff]  ;;  %vm297_vm2 = vcmask 7168   ;;  %vm303_vm3 = vcmask 15368   ;;  %vm309_vm4 = vcmask 23568  }
   0x2   :  { %v352_v3 = vpack.c.bf16 %v15_v2, %v14_v1  ;;  %334 = vmatprep.mubr.msk.f32.mxu0 %vm373_vm0, %v374_v4  ;;  %341 = vmatprep.mubr.msk.f32.mxu1 %vm373_vm0, %v374_v4  ;;  %v17_v5 = vld [vmem:[%s426_s0] sm:$0xff]  ;;  %v317_v6 = vld [vmem:[%s426_s0 + $0x8] sm:$0xff]  ;;  %s376_s0 = smov 1  }
   0x3   :  { %v315_v8 = vld [vmem:[%s427_s2] ss:$0 sm:$0xff]  ;;  %s377_s2 = smov 2  }
   0x4   :  { %353 = vmatpush3.bf16.msra.mxu0 %v352_v3  ;;  %356 = vmatpush3.bf16.msra.mxu1 %v352_v3 }
   0x5   :  { %357 = vmatprep.subr.bf16.mxu0 %v372_v0 }
   0x7   :  { %335 = vmatmul.mubr.msk.f32.vlgmr.msra.gmra.mrb[0].mxu0 %vm24_vm1, %v17_v5  ;;  %342 = vmatmul.mubr.msk.f32.vlgmr.msra.gmra.mrb[0].mxu1 %vm24_vm1, %v317_v6 }
   0x8   :  { %359 = vmatpush3.bf16.msra.mxu0 %v352_v3  ;;  %348 = vmatprep.mubr.msk.f32.mxu0 %vm373_vm0, %v374_v4 }
   0xb   :  { %349 = vmatmul.mubr.msk.f32.vlgmr.msra.gmra.mrb[2].mxu0 %vm24_vm1, %v319_v7 }
  0xda   :  { %v94_v9 = vpop.f32.mrb[0].mxu0  ;;  %v169_v10 = vpop.f32.mrb[0].mxu1 }
  0xdb   :  { %v95_v11 = vadd.f32 %v315_v8, %v94_v9  ;;  %v170_v12 = vadd.f32 %v315_v8, %v169_v10  ;;  %v336_v13 = vpop.f32.mrb[1].mxu0  ;;  %v343_v14 = vpop.f32.mrb[1].mxu1 }
  0xdd   :  { %v248_v15 = vmul.f32 %v95_v11, %v95_v11  ;;  %v266_v16 = vmul.f32 %v170_v12, %v95_v11  ;;  %v254_v20 = vmul.f32 %v170_v12, %v170_v12 }
  0xde   :  { %v244_v17 = vpop.f32.mrb[2].mxu0 }
  0xdf   :  { %v245_v18 = vadd.f32 %v315_v8, %v244_v17  ;;  %250 = vrot.lane.b32.xlu0 %v248_v15, %s375_s23  ;;  %v350_v19 = vpop.f32.mrb[3].mxu0 }
  0xe1   :  { %v260_v21 = vmul.f32 %v245_v18, %v245_v18  ;;  %v272_v22 = vmul.f32 %v245_v18, %v95_v11  ;;  %v278_v23 = vmul.f32 %v245_v18, %v170_v12 }
  0xe3   :  { %256 = vrot.lane.b32.xlu0 %v254_v20, %s375_s23  ;;  %262 = vrot.lane.b32.xlu1 %v260_v21, %s375_s23 }
  0xe7   :  { %274 = vrot.lane.b32.xlu0 %v272_v22, %s375_s23  ;;  %268 = vrot.lane.b32.xlu1 %v266_v16, %s375_s23 }
  0xeb   :  { %280 = vrot.lane.b32.xlu1 %v278_v23, %s375_s23 }
 0x151   :  { %v251_v24 = vpop.permute.xlu0 %250 }
 0x152   :  { %v253_v27 = vadd.f32 %v251_v24, %v248_v15 }
 0x155   :  { %v257_v25 = vpop.permute.xlu0 %256  ;;  %v263_v26 = vpop.permute.xlu1 %262 }
 0x156   :  { %v259_v28 = vadd.f32 %v257_v25, %v254_v20  ;;  %v265_v29 = vadd.f32 %v263_v26, %v260_v21 }
 0x158   :  { %v284_v30 = vmul.f32 %v259_v28, %v253_v27  ;;  %v288_v31 = vmul.f32 %v265_v29, %v253_v27  ;;  %v292_v32 = vmul.f32 %v265_v29, %v259_v28 }
 0x159   :  { %v269_v36 = vpop.permute.xlu1 %268  ;;  %v275_v37 = vpop.permute.xlu0 %274 }
 0x15a   :  { %v285_v33 = vmax.f32 %v284_v30, 1e-16  ;;  %v289_v34 = vmax.f32 %v288_v31, 1e-16  ;;  %v293_v35 = vmax.f32 %v292_v32, 1e-16  ;;  %v271_v39 = vadd.f32 %v269_v36, %v266_v16 }
 0x15b   :  { %v277_v41 = vadd.f32 %v275_v37, %v272_v22 }
 0x15c   :  { %366 = vrsqrt.f32 %v285_v33 }
 0x15d   :  { %368 = vrsqrt.f32 %v289_v34  ;;  %v281_v38 = vpop.permute.xlu1 %280 }
 0x15e   :  { %370 = vrsqrt.f32 %v293_v35  ;;  %v283_v44 = vadd.f32 %v281_v38, %v278_v23 }
 0x166   :  { %v367_v40 = vpop.eup %366 }
 0x167   :  { %v369_v42 = vpop.eup %368  ;;  %v287_v43 = vmul.f32 %v367_v40, %v271_v39 }
 0x168   :  { %v371_v45 = vpop.eup %370  ;;  %v291_v46 = vmul.f32 %v369_v42, %v277_v41 }
 0x169   :  { %v295_v47 = vmul.f32 %v371_v45, %v283_v44  ;;  %300 = vrot.lane.b32.xlu0 %v287_v43, %s376_s0 }
 0x16a   :  { %306 = vrot.lane.b32.xlu1 %v291_v46, %s377_s2 }
 0x16b   :  { %v296_v48 = vsub.f32 1.0, %v295_v47 }
 0x16d   :  { %298 = vst.msk [vmem:[%s428_s3] sm:$0xff] %vm297_vm2, %v296_v48 }
 0x1db   :  { %v301_v49 = vpop.permute.xlu0 %300 }
 0x1dc   :  { %304 = vst.msk [vmem:[%s428_s3] sm:$0xff] %vm303_vm3, %v301_v49  ;;  %v307_v50 = vpop.permute.xlu1 %306 }
 0x1dd   :  { %310 = vst.msk [vmem:[%s428_s3] sm:$0xff] %vm309_vm4, %v307_v50 }

</bundles_post_ra>
